<compile_context>
chip_gen: v6e
topology: v6e:2x2x1
jax: 0.10.0
libtpu: 0.0.40
codegen_flags: <defaults>
</compile_context>

<pallas_src>
import functools
import math

import numpy as np
import jax
import jax.numpy as jnp
from jax.experimental import pallas as pl
from jax.experimental.pallas import tpu as pltpu


def _cdiv(a, b):
    return (a + b - 1) // b


def _auto_tile_config(row_width):
    """Pick tile rows from the f32 compute footprint and a matching VMEM limit."""
    block_bytes = 4 * 1024 * 1024        # per-input block; safe on v7x (64 MiB/core VMEM)
    vmem_limit = 40 * 1024 * 1024
    try:
        info = pltpu.get_tpu_info()
        if getattr(info, "vmem_capacity_bytes", 0) >= 96 * 1024 * 1024:
            block_bytes = 8 * 1024 * 1024    # v5e / v6e: 128 MiB VMEM -> bigger tiles
            vmem_limit = 96 * 1024 * 1024
    except Exception:
        pass
    tile_rows = max(8, (block_bytes // (row_width * 4)) // 8 * 8)
    return tile_rows, vmem_limit


def _distance_loss_kernel(seg_ref, x_ref, y_ref, o_ref, acc_ref, *,
                          rows_total, tile_rows, need_mask):
    """Streams one (tile_rows, row_width) tile of x/y per grid step."""
    step = pl.program_id(0)

    @pl.when(step == 0)
    def _init():
        acc_ref[...] = jnp.zeros_like(acc_ref)

    # Cast in-kernel (after the DMA) so HBM traffic stays in the native dtype.
    x = x_ref[...].astype(jnp.float32)
    y = y_ref[...].astype(jnp.float32)
    d = x - y
    sq = d * d                                           # (tile_rows, row_width)

    # Per-point sum of squares: MXU segment-sum against the resident constant
    # block-diagonal matrix (row_width, ppr).  HIGHEST precision: keep f32 operands
    # un-truncated (the MXU has huge slack; this kernel is HBM-bound).
    per_point = jnp.dot(sq, seg_ref[...],
                        preferred_element_type=jnp.float32,
                        precision=jax.lax.Precision.HIGHEST)
    dist = jnp.sqrt(per_point)                           # (tile_rows, ppr) per-point L2

    if need_mask:
        # The last grid block overhangs the array: rows >= rows_total hold garbage
        # (possibly NaN/inf) -> select 0 for them.  rows_total/tile_rows are trace-time.
        rem = rows_total - step * tile_rows
        row_id = jax.lax.broadcasted_iota(jnp.int32, dist.shape, 0)
        dist = jnp.where(row_id < rem, dist, 0.0)

    # Lane-parallel accumulation (pure VPU adds); no cross-lane reduce per step.
    acc_ref[...] += dist

    @pl.when(step == pl.num_programs(0) - 1)
    def _finalize():
        # Single cross-sublane reduce at the very end; the tiny ppr-wide cross-lane
        # sum + the divide by n_points happen once in the wrapper.
        o_ref[...] = jnp.sum(acc_ref[...], axis=0, keepdims=True)


def distance_loss(inp, tgt, *, tile_rows=None):
    """Pallas equivalent of DistanceLoss().forward(input, target)."""
    assert inp.shape == tgt.shape, (inp.shape, tgt.shape)
    feat = inp.shape[-1]
    n_points = math.prod(inp.shape[:-1]) if inp.ndim > 1 else 1

    if feat <= 128 and 128 % feat == 0:
        ppr = 128 // feat                 # points packed per 128-lane row
        row_width = 128
        if n_points % ppr == 0:
            # Free row-major reshape straight to the lane-dense slab: no HBM copy.
            x = inp.reshape(-1, row_width)
            y = tgt.reshape(-1, row_width)
        else:
            # Tiny fallback pad (< ppr zero points; they contribute dist 0 and the mean
            # divides by the true n_points).
            pad = ppr - n_points % ppr
            x = jnp.pad(inp.reshape(-1, feat), ((0, pad), (0, 0))).reshape(-1, row_width)
            y = jnp.pad(tgt.reshape(-1, feat), ((0, pad), (0, 0))).reshape(-1, row_width)
    else:
        # Generic fallback: pad the feature dim to a lane multiple (zero diff -> no
        # contribution); one point per row.
        ppr = 1
        row_width = _cdiv(feat, 128) * 128
        x = jnp.pad(inp.reshape(-1, feat), ((0, 0), (0, row_width - feat)))
        y = jnp.pad(tgt.reshape(-1, feat), ((0, 0), (0, row_width - feat)))

    rows_total = x.shape[0]

    auto_tile, vmem_limit = _auto_tile_config(row_width)
    if tile_rows is None:
        tile_rows = auto_tile
    tile_rows = max(8, (int(tile_rows) // 8) * 8)
    if tile_rows >= rows_total:
        tile_rows = rows_total            # single full-array block: always a legal shape
    n_tiles = _cdiv(rows_total, tile_rows)
    need_mask = (rows_total % tile_rows) != 0

    # Trace-time constant block-diagonal segment-sum matrix:
    # lane l belongs to point group l // (row_width // ppr).
    seg = jnp.asarray(np.kron(np.eye(ppr, dtype=np.float32),
                              np.ones((row_width // ppr, 1), dtype=np.float32)))

    kernel = functools.partial(_distance_loss_kernel, rows_total=rows_total,
                               tile_rows=tile_rows, need_mask=need_mask)
    data_spec = pl.BlockSpec((tile_rows, row_width), lambda i: (i, 0))

    col_sums = pl.pallas_call(
        kernel,
        out_shape=jax.ShapeDtypeStruct((1, ppr), jnp.float32),
        grid=(n_tiles,),
        in_specs=[pl.BlockSpec((row_width, ppr), lambda i: (0, 0)),   # seg: resident block
                  data_spec, data_spec],
        out_specs=pl.BlockSpec((1, ppr), lambda i: (0, 0)),
        scratch_shapes=[pltpu.VMEM((tile_rows, ppr), jnp.float32)],
        compiler_params=pltpu.CompilerParams(
            dimension_semantics=("arbitrary",),
            vmem_limit_bytes=vmem_limit,
        ),
    )(seg, x, y)

    # Single divide by the true point count, done once outside the streaming loop.
    return jnp.sum(col_sums) / jnp.float32(n_points)


def _reference(inp, tgt):
    d = inp.astype(jnp.float32) - tgt.astype(jnp.float32)
    return jnp.mean(jnp.sqrt(jnp.sum(d * d, axis=-1)))


if __name__ == "__main__":
    key = jax.random.PRNGKey(0)
    k1, k2, k3, k4, k5, k6 = jax.random.split(key, 6)

    # 1) Small shape consistent with the LSTM autoencoder: batch=2, seq=8, hidden=32.
    inp = jax.random.normal(k1, (2, 8, 32), dtype=jnp.float32)
    tgt = jax.random.normal(k2, (2, 8, 32), dtype=jnp.float32)
    loss = jax.block_until_ready(distance_loss(inp, tgt))
    ref = _reference(inp, tgt)
    assert jnp.allclose(loss, ref, rtol=1e-4, atol=1e-4), (loss, ref)

    # 2) Multi-tile streaming with a partial (in-kernel masked) last block.
    inp2 = jax.random.normal(k3, (4, 1001, 32), dtype=jnp.float32)
    tgt2 = jax.random.normal(k4, (4, 1001, 32), dtype=jnp.float32)
    loss2 = jax.block_until_ready(distance_loss(inp2, tgt2, tile_rows=512))
    ref2 = _reference(inp2, tgt2)
    assert jnp.allclose(loss2, ref2, rtol=1e-4, atol=1e-4), (loss2, ref2)

    # 3) Point count not a multiple of 128//D -> tiny-pad fallback path.
    inp3 = jax.random.normal(k5, (3, 7, 32), dtype=jnp.float32)
    tgt3 = jax.random.normal(k6, (3, 7, 32), dtype=jnp.float32)
    loss3 = jax.block_until_ready(distance_loss(inp3, tgt3))
    ref3 = _reference(inp3, tgt3)
    assert jnp.allclose(loss3, ref3, rtol=1e-4, atol=1e-4), (loss3, ref3)

    print("KERNEL_OK")
</pallas_src>

<mosaic_0001>
module attributes {stable_mosaic.version = 11 : i64} {
  func.func @_distance_loss_kernel(%arg0: i32, %arg1: memref<128x4xf32, #tpu.memory_space<vmem>>, %arg2: memref<4x128xf32, #tpu.memory_space<vmem>>, %arg3: memref<4x128xf32, #tpu.memory_space<vmem>>, %arg4: memref<1x4xf32, #tpu.memory_space<vmem>>, %arg5: memref<4x4xf32, #tpu.memory_space<vmem>>) attributes {dimension_semantics = [#tpu.dimension_semantics<arbitrary>], iteration_bounds = array<i64: 1>, scalar_prefetch = 0 : i64, scratch_operands = 1 : i64, tpu.core_type = #tpu.core_type<tc>, window_params = [{pipeline_mode = #tpu.pipeline_mode<synchronous>, transform_indices = @transform_0, window_bounds = array<i64: 128, 4>}, {transform_indices = @transform_1, window_bounds = array<i64: 4, 128>}, {transform_indices = @transform_2, window_bounds = array<i64: 4, 128>}, {pipeline_mode = #tpu.pipeline_mode<synchronous>, transform_indices = @transform_3, window_bounds = array<i64: 1, 4>}]} {
    %c0_i32 = arith.constant 0 : i32
    %0 = arith.cmpi eq, %arg0, %c0_i32 : i32
    %1 = arith.extui %0 : i1 to i32
    %c0_i32_0 = arith.constant 0 : i32
    %2 = arith.cmpi ne, %1, %c0_i32_0 : i32
    scf.if %2 {
      %cst_12 = arith.constant 0.000000e+00 : f32
      %16 = vector.broadcast %cst_12 : f32 to vector<4x4xf32>
      %c0_13 = arith.constant 0 : index
      %c0_14 = arith.constant 0 : index
      %17 = vector.load %arg5[%c0_13, %c0_14] : memref<4x4xf32, #tpu.memory_space<vmem>>, vector<4x4xf32>
      tpu.vector_store %arg5[%c0_13, %c0_14], %16 {strides = array<i32>} : memref<4x4xf32, #tpu.memory_space<vmem>>, vector<4x4xf32>,
    } else {
    }
    %c0 = arith.constant 0 : index
    %c0_1 = arith.constant 0 : index
    %3 = vector.load %arg2[%c0, %c0_1] : memref<4x128xf32, #tpu.memory_space<vmem>>, vector<4x128xf32>
    %c0_2 = arith.constant 0 : index
    %c0_3 = arith.constant 0 : index
    %4 = vector.load %arg3[%c0_2, %c0_3] : memref<4x128xf32, #tpu.memory_space<vmem>>, vector<4x128xf32>
    %5 = arith.subf %3, %4 : vector<4x128xf32>
    %6 = arith.mulf %5, %5 : vector<4x128xf32>
    %c0_4 = arith.constant 0 : index
    %c0_5 = arith.constant 0 : index
    %7 = vector.load %arg1[%c0_4, %c0_5] : memref<128x4xf32, #tpu.memory_space<vmem>>, vector<128x4xf32>
    %cst = arith.constant dense<0.000000e+00> : vector<4x4xf32>
    %8 = tpu.matmul %6, %7, %cst {dimension_numbers = #tpu.dot_dimension_numbers<[1], [0], [0], [1], [0, 0, 1, 1], [], []>, precision = #tpu.contract_precision<fp32>} : vector<4x128xf32>, vector<128x4xf32>, vector<4x4xf32> -> vector<4x4xf32>
    %9 = math.sqrt %8 : vector<4x4xf32>
    %c0_6 = arith.constant 0 : index
    %c0_7 = arith.constant 0 : index
    %10 = vector.load %arg5[%c0_6, %c0_7] : memref<4x4xf32, #tpu.memory_space<vmem>>, vector<4x4xf32>
    %11 = arith.addf %10, %9 : vector<4x4xf32>
    %c0_8 = arith.constant 0 : index
    %c0_9 = arith.constant 0 : index
    %12 = vector.load %arg5[%c0_8, %c0_9] : memref<4x4xf32, #tpu.memory_space<vmem>>, vector<4x4xf32>
    tpu.vector_store %arg5[%c0_8, %c0_9], %11 {strides = array<i32>} : memref<4x4xf32, #tpu.memory_space<vmem>>, vector<4x4xf32>,
    %c0_i32_10 = arith.constant 0 : i32
    %13 = arith.cmpi eq, %arg0, %c0_i32_10 : i32
    %14 = arith.extui %13 : i1 to i32
    %c0_i32_11 = arith.constant 0 : i32
    %15 = arith.cmpi ne, %14, %c0_i32_11 : i32
    scf.if %15 {
      %c0_12 = arith.constant 0 : index
      %c0_13 = arith.constant 0 : index
      %16 = vector.load %arg5[%c0_12, %c0_13] : memref<4x4xf32, #tpu.memory_space<vmem>>, vector<4x4xf32>
      %cst_14 = arith.constant dense<0.000000e+00> : vector<4xf32>
      %17 = vector.multi_reduction <add>, %16, %cst_14 [0] : vector<4x4xf32> to vector<4xf32>
      %18 = vector.shape_cast %17 : vector<4xf32> to vector<1x4xf32>
      %c0_15 = arith.constant 0 : index
      %c0_16 = arith.constant 0 : index
      %19 = vector.load %arg4[%c0_15, %c0_16] : memref<1x4xf32, #tpu.memory_space<vmem>>, vector<1x4xf32>
      tpu.vector_store %arg4[%c0_15, %c0_16], %18 {strides = array<i32>} : memref<1x4xf32, #tpu.memory_space<vmem>>, vector<1x4xf32>,
    } else {
    }
    return
  }
  func.func @transform_0(%arg0: i32) -> (i32, i32) {
    %c0_i32 = arith.constant 0 : i32
    %c0_i32_0 = arith.constant 0 : i32
    %c0_i32_1 = arith.constant 0 : i32
    return %c0_i32, %c0_i32_0 : i32, i32
  }
  func.func @transform_1(%arg0: i32) -> (i32, i32) {
    %c0_i32 = arith.constant 0 : i32
    %c0_i32_0 = arith.constant 0 : i32
    return %arg0, %c0_i32 : i32, i32
  }
  func.func @transform_2(%arg0: i32) -> (i32, i32) {
    %c0_i32 = arith.constant 0 : i32
    %c0_i32_0 = arith.constant 0 : i32
    return %arg0, %c0_i32 : i32, i32
  }
  func.func @transform_3(%arg0: i32) -> (i32, i32) {
    %c0_i32 = arith.constant 0 : i32
    %c0_i32_0 = arith.constant 0 : i32
    %c0_i32_1 = arith.constant 0 : i32
    return %c0_i32, %c0_i32_0 : i32, i32
  }
}

</mosaic_0001>

<bundles_post_ra>
// kernel: tpu_custom_call.1
= control target key start
LH: loop header
LB: loop body
LE: loop exit
PB: predicated region body
PF: predicated region fallthrough
CT: control target
= control target key end

     0   :  { %v1059_v3 = vmov 0.0   ;;  %vm1060_vm0 = vmmov 0   ;;  %s1506_s0 = inlined_call_operand.vmem [shape: f32[128,4], index: 0, kind: input, shape index: {}]   ;;  %s1507_s1 = inlined_call_operand.vmem [shape: f32[4,128], index: 1, kind: input, shape index: {}]   ;;  %s1508_s2 = inlined_call_operand.vmem [shape: f32[4,128], index: 2, kind: input, shape index: {}]   ;;  %s1509_s3 = inlined_call_operand.hbm [shape: f32[1,4], index: 3, kind: output, shape index: {}]  }
   0x1   :  { %v40_v0 = vld [vmem:[%s1506_s0 + $0x78] sm:$0xff]  ;;  %v39_v1 = vld [vmem:[%s1506_s0 + $0x70] sm:$0xff]  ;;  %v38_v2 = vld [vmem:[%s1506_s0 + $0x68] sm:$0xff]  ;;  %822 = vmatprep.subr.mxu0 %v1059_v3  ;;  %857 = vmatprep.subr.mxu1 %v1059_v3 }
   0x2   :  { %v1092_v4 = vand.u32 4294901760, %v40_v0  ;;  %v1094_v5 = vand.u32 4294901760, %v39_v1  ;;  %v1096_v6 = vand.u32 4294901760, %v38_v2  ;;  %v37_v7 = vld [vmem:[%s1506_s0 + $0x60] sm:$0xff]  ;;  %v36_v8 = vld [vmem:[%s1506_s0 + $0x58] sm:$0xff]  ;;  %v35_v9 = vld [vmem:[%s1506_s0 + $0x50] sm:$0xff]  ;;  %854 = vmatprep.mubr.msk.f32.mxu0 %vm1060_vm0, %v1059_v3  ;;  %889 = vmatprep.mubr.msk.f32.mxu1 %vm1060_vm0, %v1059_v3 }
   0x3   :  { %v1108_v10 = vand.u32 4294901760, %v37_v7  ;;  %v1110_v11 = vand.u32 4294901760, %v36_v8  ;;  %v1112_v12 = vand.u32 4294901760, %v35_v9  ;;  %v34_v13 = vld [vmem:[%s1506_s0 + $0x48] sm:$0xff]  ;;  %v33_v14 = vld [vmem:[%s1506_s0 + $0x40] sm:$0xff]  ;;  %v32_v19 = vld [vmem:[%s1506_s0 + $0x38] sm:$0xff] }
   0x4   :  { %823 = vmatpush3.msra.mxu0 %v1092_v4  ;;  %v1126_v15 = vsub.f32 %v40_v0, %v1092_v4  ;;  %v1129_v16 = vsub.f32 %v39_v1, %v1094_v5  ;;  %v1131_v17 = vand.u32 4294901760, %v34_v13  ;;  %v1134_v18 = vsub.f32 %v38_v2, %v1096_v6  ;;  %v31_v26 = vld [vmem:[%s1506_s0 + $0x30] sm:$0xff]  ;;  %v30_v34 = vld [vmem:[%s1506_s0 + $0x28] sm:$0xff] }
   0x5   :  { %824 = vmatprep.subr.mxu0 %v1059_v3  ;;  %v1141_v20 = vsub.f32 %v37_v7, %v1108_v10  ;;  %v1144_v21 = vsub.f32 %v36_v8, %v1110_v11  ;;  %v1150_v25 = vand.u32 4294901760, %v33_v14  ;;  %v1157_v28 = vand.u32 4294901760, %v32_v19 }
   0x6   :  { %825 = vmatpush3.msra.mxu0 %v1094_v5  ;;  %v135_v22 = vand.u32 4294901760, %v1126_v15  ;;  %v142_v23 = vand.u32 4294901760, %v1129_v16  ;;  %v149_v24 = vand.u32 4294901760, %v1134_v18  ;;  %v1161_v30 = vsub.f32 %v35_v9, %v1112_v12 }
   0x7   :  { %826 = vmatprep.subr.mxu0 %v1059_v3  ;;  %v156_v27 = vand.u32 4294901760, %v1141_v20  ;;  %v163_v29 = vand.u32 4294901760, %v1144_v21  ;;  %v1177_v35 = vsub.f32 %v34_v13, %v1131_v17 }
   0x8   :  { %827 = vmatpush3.msra.mxu0 %v1096_v6  ;;  %v136_v31 = vsub.f32 %v1126_v15, %v135_v22  ;;  %v143_v32 = vsub.f32 %v1129_v16, %v142_v23  ;;  %v150_v33 = vsub.f32 %v1134_v18, %v149_v24 }
   0x9   :  { %8 = vsyncpa [#allocation4], 0  ;;  %828 = vmatprep.subr.mxu0 %v1059_v3  ;;  %v1180_v36 = vand.u32 4294901760, %v31_v26  ;;  %v157_v39 = vsub.f32 %v1141_v20, %v156_v27  ;;  %v170_v40 = vand.u32 4294901760, %v1161_v30  ;;  %v29_v41 = vld [vmem:[%s1506_s0 + $0x20] sm:$0xff]  ;;  %v1191_v42 = vand.u32 4294901760, %v30_v34 }
   0xa   :  { %829 = vmatpush3.msra.mxu0 %v1108_v10  ;;  %v137_v37 = vand.u32 4294901760, %v136_v31  ;;  %v144_v38 = vand.u32 4294901760, %v143_v32  ;;  %v1194_v43 = vsub.f32 %v33_v14, %v1150_v25  ;;  %v151_v44 = vand.u32 4294901760, %v150_v33  ;;  %v21_v48 = vld [vmem:[%s1507_s1] sm:$0xf]  ;;  %v28_v51 = vld [vmem:[%s1506_s0 + $0x18] sm:$0xff] }
   0xb   :  { %830 = vmatprep.subr.mxu0 %v1059_v3  ;;  %v164_v45 = vsub.f32 %v1144_v21, %v163_v29  ;;  %v177_v46 = vand.u32 4294901760, %v1177_v35  ;;  %v1202_v47 = vsub.f32 %v32_v19, %v1157_v28  ;;  %v22_v49 = vld [vmem:[%s1508_s2] sm:$0xf]  ;;  %v1212_v50 = vand.u32 4294901760, %v29_v41  ;;  %v27_v55 = vld [vmem:[%s1506_s0 + $0x10] sm:$0xff]  ;;  %v26_v0 = vld [vmem:[%s1506_s0 + $0x8] sm:$0xff] }
   0xc   :  { %831 = vmatpush3.msra.mxu0 %v1110_v11  ;;  %858 = vmatpush3.msra.mxu1 %v137_v37  ;;  %v158_v52 = vand.u32 4294901760, %v157_v39  ;;  %v171_v53 = vsub.f32 %v1161_v30, %v170_v40  ;;  %v184_v54 = vand.u32 4294901760, %v1194_v43  ;;  %v1226_v56 = vsub.f32 %v31_v26, %v1180_v36  ;;  %v25_v9 = vld [vmem:[%s1506_s0] sm:$0xff]  ;;  %s1061_s0 = smov [#allocation3]  }
   0xd   :  { %832 = vmatprep.subr.mxu0 %v1059_v3  ;;  %859 = vmatprep.subr.mxu1 %v1059_v3  ;;  %v191_v57 = vand.u32 4294901760, %v1202_v47  ;;  %v23_v58 = vsub.f32 %v21_v48, %v22_v49  ;;  %v165_v59 = vand.u32 4294901760, %v164_v45  ;;  %v178_v60 = vsub.f32 %v1177_v35, %v177_v46  ;;  %s712_s19 = sshll.u32 %s1061_s0, 4  ;;  %s713_s19 = int_to_ptr.vmem [resolvable:$true] %s712_s19 }
   0xe   :  { %833 = vmatpush3.msra.mxu0 %v1112_v12  ;;  %860 = vmatpush3.msra.mxu1 %v144_v38  ;;  %v1235_v61 = vand.u32 4294901760, %v28_v51  ;;  %v1238_v62 = vsub.f32 %v30_v34, %v1191_v42  ;;  %v1242_v63 = vand.u32 4294901760, %v27_v55  ;;  %v172_v2 = vand.u32 4294901760, %v171_v53  ;;  %s1037_s20 = scalar_lea.vmem %s713_s19, 16  ;;  %s1041_s21 = scalar_lea.vmem %s713_s19, 32 }
   0xf   :  { %834 = vmatprep.subr.mxu0 %v1059_v3  ;;  %861 = vmatprep.subr.mxu1 %v1059_v3  ;;  %v24_v1 = vmul.f32 %v23_v58, %v23_v58  ;;  %v185_v7 = vsub.f32 %v1194_v43, %v184_v54  ;;  %v198_v8 = vand.u32 4294901760, %v1226_v56  ;;  %v1256_v13 = vsub.f32 %v29_v41, %v1212_v50  ;;  %p1038_p0 = scmp.ne.s32.totalorder %s713_s19, %s1037_s20  ;;  %p1042_p1 = scmp.lt.s32.totalorder %s713_s19, %s713_s19 }
  0x10   :  { %835 = vmatpush3.msra.mxu0 %v1131_v17  ;;  %862 = vmatpush3.msra.mxu1 %v151_v44  ;;  %v192_v14 = vsub.f32 %v1202_v47, %v191_v57  ;;  %v179_v26 = vand.u32 4294901760, %v178_v60  ;;  %v1266_v31 = vand.u32 4294901760, %v26_v0  ;;  %v205_v32 = vand.u32 4294901760, %v1238_v62  ;;  %p1043_p2 = scmp.lt.s32.totalorder %s1041_s21, %s1037_s20 }
  0x11   :  { %836 = vmatprep.subr.mxu0 %v1059_v3  ;;  %863 = vmatprep.subr.mxu1 %v1059_v3  ;;  %v1263_v19 = vand.u32 4294901760, %v24_v1  ;;  %v1270_v33 = vsub.f32 %v28_v51, %v1235_v61  ;;  %v1274_v34 = vand.u32 4294901760, %v25_v9  ;;  %v186_v38 = vand.u32 4294901760, %v185_v7 }
  0x12   :  { %837 = vmatpush3.msra.mxu0 %v1150_v25  ;;  %864 = vmatpush3.msra.mxu1 %v158_v52  ;;  %v199_v39 = vsub.f32 %v1226_v56, %v198_v8  ;;  %v212_v41 = vand.u32 4294901760, %v1256_v13  ;;  %v1285_v44 = vsub.f32 %v27_v55, %v1242_v63  ;;  %v193_v45 = vand.u32 4294901760, %v192_v14  ;;  %p1044_p3 = por %p1043_p2, %p1042_p1 }
  0x13   :  { %838 = vmatprep.subr.mxu0 %v1059_v3  ;;  %865 = vmatprep.subr.mxu1 %v1059_v3  ;;  %v1277_v37 = vsub.f32 %v24_v1, %v1263_v19  ;;  %v206_v48 = vsub.f32 %v1238_v62, %v205_v32  ;;  %v219_v51 = vand.u32 4294901760, %v1270_v33  ;;  %v1296_v52 = vsub.f32 %v26_v0, %v1266_v31 }
  0x14   :  { %839 = vmatpush3.msra.mxu0 %v1157_v28  ;;  %866 = vmatpush3.msra.mxu1 %v165_v59  ;;  %v200_v53 = vand.u32 4294901760, %v199_v39  ;;  %v213_v55 = vsub.f32 %v1256_v13, %v212_v41  ;;  %v226_v58 = vand.u32 4294901760, %v1285_v44  ;;  %v1306_v59 = vsub.f32 %v25_v9, %v1274_v34  ;;  %p1045_p4 = pnand %p1044_p3, %p1038_p0 }
  0x15   :  { %840 = vmatprep.subr.mxu0 %v1059_v3  ;;  %867 = vmatprep.subr.mxu1 %v1059_v3  ;;  %v124_v49 = vand.u32 4294901760, %v1277_v37  ;;  %v207_v60 = vand.u32 4294901760, %v206_v48  ;;  %v220_v1 = vsub.f32 %v1270_v33, %v219_v51  ;;  %vm19_vm1 = vcmask 27648  }
  0x16   :  { %841 = vmatpush3.msra.mxu0 %v1180_v36  ;;  %868 = vmatpush3.msra.mxu1 %v172_v2  ;;  %v233_v2 = vand.u32 4294901760, %v1296_v52  ;;  %v214_v7 = vand.u32 4294901760, %v213_v55  ;;  %v227_v9 = vsub.f32 %v1285_v44, %v226_v58  ;;  %v240_v14 = vand.u32 4294901760, %v1306_v59  ;;  %20 = vst.msk [vmem:[#allocation2] sm:$0xf] %vm19_vm1, %v1059_v3 }
  0x17   :  { %842 = vmatprep.subr.mxu0 %v1059_v3  ;;  %869 = vmatprep.subr.mxu1 %v1059_v3  ;;  %v125_v0 = vsub.f32 %v1277_v37, %v124_v49  ;;  %vm704_vm4 = vcmask 24576  }
  0x18   :  { %843 = vmatpush3.msra.mxu0 %v1191_v42  ;;  %870 = vmatpush3.msra.mxu1 %v179_v26  ;;  %v234_v39 = vsub.f32 %v1296_v52, %v233_v2  ;;  %v241_v48 = vsub.f32 %v1306_v59, %v240_v14 }
  0x19   :  { %844 = vmatprep.subr.mxu0 %v1059_v3  ;;  %871 = vmatprep.subr.mxu1 %v1059_v3  ;;  %v126_v26 = vand.u32 4294901760, %v125_v0 }
  0x1a   :  { %845 = vmatpush3.msra.mxu0 %v1212_v50  ;;  %872 = vmatpush3.msra.mxu1 %v186_v38  ;;  %v221_v38 = vand.u32 4294901760, %v220_v1  ;;  %v242_v55 = vand.u32 4294901760, %v241_v48 }
  0x1b   :  { %846 = vmatprep.subr.mxu0 %v1059_v3  ;;  %873 = vmatprep.subr.mxu1 %v1059_v3 }
  0x1c   :  { %847 = vmatpush3.msra.mxu0 %v1235_v61  ;;  %874 = vmatpush3.msra.mxu1 %v193_v45  ;;  %v228_v45 = vand.u32 4294901760, %v227_v9 }
  0x1d   :  { %848 = vmatprep.subr.mxu0 %v1059_v3  ;;  %875 = vmatprep.subr.mxu1 %v1059_v3 }
  0x1e   :  { %849 = vmatpush3.msra.mxu0 %v1242_v63  ;;  %876 = vmatpush3.msra.mxu1 %v200_v53  ;;  %v235_v53 = vand.u32 4294901760, %v234_v39 }
  0x1f   :  { %850 = vmatprep.subr.mxu0 %v1059_v3  ;;  %877 = vmatprep.subr.mxu1 %v1059_v3 }
  0x20   :  { %851 = vmatpush3.msra.mxu0 %v1266_v31  ;;  %878 = vmatpush3.msra.mxu1 %v207_v60 }
  0x21   :  { %852 = vmatprep.subr.mxu0 %v1059_v3  ;;  %879 = vmatprep.subr.mxu1 %v1059_v3 }
  0x22   :  { %853 = vmatpush3.msra.mxu0 %v1274_v34  ;;  %880 = vmatpush3.msra.mxu1 %v214_v7 }
  0x23   :  { %881 = vmatprep.subr.mxu1 %v1059_v3  ;;  %892 = vmatprep.subr.mxu0 %v1059_v3 }
  0x24   :  { %855 = vmatmul.mubr.f32.vlgmr.msra.gmra.mxu0 %v126_v26  ;;  %882 = vmatpush3.msra.mxu1 %v221_v38 }
  0x25   :  { %893 = vmatpush3.msra.mxu0 %v1126_v15  ;;  %883 = vmatprep.subr.mxu1 %v1059_v3 }
  0x26   :  { %894 = vmatprep.subr.mxu0 %v1059_v3  ;;  %884 = vmatpush3.msra.mxu1 %v228_v45 }
  0x27   :  { %895 = vmatpush3.msra.mxu0 %v1129_v16  ;;  %885 = vmatprep.subr.mxu1 %v1059_v3 }
  0x28   :  { %896 = vmatprep.subr.mxu0 %v1059_v3  ;;  %886 = vmatpush3.msra.mxu1 %v235_v53 }
  0x29   :  { %897 = vmatpush3.msra.mxu0 %v1134_v18  ;;  %887 = vmatprep.subr.mxu1 %v1059_v3 }
  0x2a   :  { %898 = vmatprep.subr.mxu0 %v1059_v3  ;;  %888 = vmatpush3.msra.mxu1 %v242_v55 }
  0x2b   :  { %899 = vmatpush3.msra.mxu0 %v1141_v20  ;;  %890 = vmatmul.mubr.f32.vlgmr.msra.gmra.mxu1 %v1263_v19 }
  0x2c   :  { %900 = vmatprep.subr.mxu0 %v1059_v3  ;;  %927 = vmatprep.subr.mxu1 %v1059_v3 }
  0x2d   :  { %901 = vmatpush3.msra.mxu0 %v1144_v21  ;;  %928 = vmatpush3.msra.mxu1 %v1092_v4 }
  0x2e   :  { %902 = vmatprep.subr.mxu0 %v1059_v3  ;;  %929 = vmatprep.subr.mxu1 %v1059_v3 }
  0x2f   :  { %903 = vmatpush3.msra.mxu0 %v1161_v30  ;;  %930 = vmatpush3.msra.mxu1 %v1094_v5  ;;  %v689_v30 = vld [vmem:[#allocation2] sm:$0xf] }
  0x30   :  { %904 = vmatprep.subr.mxu0 %v1059_v3  ;;  %931 = vmatprep.subr.mxu1 %v1059_v3 }
  0x31   :  { %905 = vmatpush3.msra.mxu0 %v1177_v35  ;;  %932 = vmatpush3.msra.mxu1 %v1096_v6 }
  0x32   :  { %906 = vmatprep.subr.mxu0 %v1059_v3  ;;  %933 = vmatprep.subr.mxu1 %v1059_v3 }
  0x33   :  { %907 = vmatpush3.msra.mxu0 %v1194_v43  ;;  %934 = vmatpush3.msra.mxu1 %v1108_v10 }
  0x34   :  { %908 = vmatprep.subr.mxu0 %v1059_v3  ;;  %935 = vmatprep.subr.mxu1 %v1059_v3 }
  0x35   :  { %909 = vmatpush3.msra.mxu0 %v1202_v47  ;;  %936 = vmatpush3.msra.mxu1 %v1110_v11 }
  0x36   :  { %910 = vmatprep.subr.mxu0 %v1059_v3  ;;  %937 = vmatprep.subr.mxu1 %v1059_v3 }
  0x37   :  { %911 = vmatpush3.msra.mxu0 %v1226_v56  ;;  %938 = vmatpush3.msra.mxu1 %v1112_v12 }
  0x38   :  { %912 = vmatprep.subr.mxu0 %v1059_v3  ;;  %939 = vmatprep.subr.mxu1 %v1059_v3 }
  0x39   :  { %913 = vmatpush3.msra.mxu0 %v1238_v62  ;;  %940 = vmatpush3.msra.mxu1 %v1131_v17 }
  0x3a   :  { %914 = vmatprep.subr.mxu0 %v1059_v3  ;;  %941 = vmatprep.subr.mxu1 %v1059_v3 }
  0x3b   :  { %915 = vmatpush3.msra.mxu0 %v1256_v13  ;;  %942 = vmatpush3.msra.mxu1 %v1150_v25 }
  0x3c   :  { %916 = vmatprep.subr.mxu0 %v1059_v3  ;;  %943 = vmatprep.subr.mxu1 %v1059_v3 }
  0x3d   :  { %917 = vmatpush3.msra.mxu0 %v1270_v33  ;;  %944 = vmatpush3.msra.mxu1 %v1157_v28 }
  0x3e   :  { %918 = vmatprep.subr.mxu0 %v1059_v3  ;;  %945 = vmatprep.subr.mxu1 %v1059_v3 }
  0x3f   :  { %919 = vmatpush3.msra.mxu0 %v1285_v44  ;;  %946 = vmatpush3.msra.mxu1 %v1180_v36 }
  0x40   :  { %920 = vmatprep.subr.mxu0 %v1059_v3  ;;  %947 = vmatprep.subr.mxu1 %v1059_v3 }
  0x41   :  { %921 = vmatpush3.msra.mxu0 %v1296_v52  ;;  %948 = vmatpush3.msra.mxu1 %v1191_v42 }
  0x42   :  { %922 = vmatprep.subr.mxu0 %v1059_v3  ;;  %949 = vmatprep.subr.mxu1 %v1059_v3 }
  0x43   :  { %923 = vmatpush3.msra.mxu0 %v1306_v59  ;;  %924 = vmatprep.mubr.msk.f32.mxu0 %vm1060_vm0, %v1059_v3 }
  0x44   :  { %950 = vmatpush3.msra.mxu1 %v1212_v50  ;;  %925 = vmatmul.mubr.f32.vlgmr.msra.gmra.mxu0 %v1277_v37 }
  0x45   :  { %951 = vmatprep.subr.mxu1 %v1059_v3  ;;  %962 = vmatprep.subr.mxu0 %v1059_v3 }
  0x46   :  { %952 = vmatpush3.msra.mxu1 %v1235_v61  ;;  %963 = vmatpush3.msra.mxu0 %v135_v22 }
  0x47   :  { %953 = vmatprep.subr.mxu1 %v1059_v3  ;;  %964 = vmatprep.subr.mxu0 %v1059_v3 }
  0x48   :  { %954 = vmatpush3.msra.mxu1 %v1242_v63  ;;  %965 = vmatpush3.msra.mxu0 %v142_v23 }
  0x49   :  { %955 = vmatprep.subr.mxu1 %v1059_v3  ;;  %966 = vmatprep.subr.mxu0 %v1059_v3 }
  0x4a   :  { %956 = vmatpush3.msra.mxu1 %v1266_v31  ;;  %967 = vmatpush3.msra.mxu0 %v149_v24 }
  0x4b   :  { %957 = vmatprep.subr.mxu1 %v1059_v3  ;;  %968 = vmatprep.subr.mxu0 %v1059_v3 }
  0x4c   :  { %958 = vmatpush3.msra.mxu1 %v1274_v34  ;;  %959 = vmatprep.mubr.msk.f32.mxu1 %vm1060_vm0, %v1059_v3 }
  0x4d   :  { %969 = vmatpush3.msra.mxu0 %v156_v27  ;;  %960 = vmatmul.mubr.f32.vlgmr.msra.gmra.mxu1 %v124_v49 }
  0x4e   :  { %970 = vmatprep.subr.mxu0 %v1059_v3  ;;  %997 = vmatprep.subr.mxu1 %v1059_v3 }
  0x4f   :  { %971 = vmatpush3.msra.mxu0 %v163_v29  ;;  %998 = vmatpush3.msra.mxu1 %v1092_v4 }
  0x50   :  { %972 = vmatprep.subr.mxu0 %v1059_v3  ;;  %999 = vmatprep.subr.mxu1 %v1059_v3 }
  0x51   :  { %973 = vmatpush3.msra.mxu0 %v170_v40  ;;  %1000 = vmatpush3.msra.mxu1 %v1094_v5 }
  0x52   :  { %974 = vmatprep.subr.mxu0 %v1059_v3  ;;  %1001 = vmatprep.subr.mxu1 %v1059_v3 }
  0x53   :  { %975 = vmatpush3.msra.mxu0 %v177_v46  ;;  %1002 = vmatpush3.msra.mxu1 %v1096_v6 }
  0x54   :  { %976 = vmatprep.subr.mxu0 %v1059_v3  ;;  %1003 = vmatprep.subr.mxu1 %v1059_v3 }
  0x55   :  { %977 = vmatpush3.msra.mxu0 %v184_v54  ;;  %1004 = vmatpush3.msra.mxu1 %v1108_v10 }
  0x56   :  { %978 = vmatprep.subr.mxu0 %v1059_v3  ;;  %1005 = vmatprep.subr.mxu1 %v1059_v3 }
  0x57   :  { %979 = vmatpush3.msra.mxu0 %v191_v57  ;;  %1006 = vmatpush3.msra.mxu1 %v1110_v11 }
  0x58   :  { %980 = vmatprep.subr.mxu0 %v1059_v3  ;;  %1007 = vmatprep.subr.mxu1 %v1059_v3 }
  0x59   :  { %981 = vmatpush3.msra.mxu0 %v198_v8  ;;  %1008 = vmatpush3.msra.mxu1 %v1112_v12 }
  0x5a   :  { %982 = vmatprep.subr.mxu0 %v1059_v3  ;;  %1009 = vmatprep.subr.mxu1 %v1059_v3 }
  0x5b   :  { %983 = vmatpush3.msra.mxu0 %v205_v32  ;;  %1010 = vmatpush3.msra.mxu1 %v1131_v17 }
  0x5c   :  { %984 = vmatprep.subr.mxu0 %v1059_v3  ;;  %1011 = vmatprep.subr.mxu1 %v1059_v3 }
  0x5d   :  { %985 = vmatpush3.msra.mxu0 %v212_v41  ;;  %1012 = vmatpush3.msra.mxu1 %v1150_v25 }
  0x5e   :  { %986 = vmatprep.subr.mxu0 %v1059_v3  ;;  %1013 = vmatprep.subr.mxu1 %v1059_v3 }
  0x5f   :  { %987 = vmatpush3.msra.mxu0 %v219_v51  ;;  %1014 = vmatpush3.msra.mxu1 %v1157_v28 }
  0x60   :  { %988 = vmatprep.subr.mxu0 %v1059_v3  ;;  %1015 = vmatprep.subr.mxu1 %v1059_v3 }
  0x61   :  { %989 = vmatpush3.msra.mxu0 %v226_v58  ;;  %1016 = vmatpush3.msra.mxu1 %v1180_v36 }
  0x62   :  { %990 = vmatprep.subr.mxu0 %v1059_v3  ;;  %1017 = vmatprep.subr.mxu1 %v1059_v3 }
  0x63   :  { %991 = vmatpush3.msra.mxu0 %v233_v2  ;;  %1018 = vmatpush3.msra.mxu1 %v1191_v42 }
  0x64   :  { %992 = vmatprep.subr.mxu0 %v1059_v3  ;;  %1019 = vmatprep.subr.mxu1 %v1059_v3 }
  0x65   :  { %993 = vmatpush3.msra.mxu0 %v240_v14  ;;  %994 = vmatprep.mubr.msk.f32.mxu0 %vm1060_vm0, %v1059_v3 }
  0x66   :  { %1020 = vmatpush3.msra.mxu1 %v1212_v50  ;;  %995 = vmatmul.mubr.f32.vlgmr.msra.gmra.mxu0 %v1263_v19 }
  0x67   :  { %1021 = vmatprep.subr.mxu1 %v1059_v3  ;;  %1029 = vmatprep.mubr.msk.f32.mxu1 %vm1060_vm0, %v1059_v3 }
  0x68   :  { %1022 = vmatpush3.msra.mxu1 %v1235_v61 }
  0x69   :  { %1023 = vmatprep.subr.mxu1 %v1059_v3 }
  0x6a   :  { %1024 = vmatpush3.msra.mxu1 %v1242_v63 }
  0x6b   :  { %1025 = vmatprep.subr.mxu1 %v1059_v3 }
  0x6c   :  { %1026 = vmatpush3.msra.mxu1 %v1266_v31 }
  0x6d   :  { %1027 = vmatprep.subr.mxu1 %v1059_v3 }
  0x6e   :  { %1028 = vmatpush3.msra.mxu1 %v1274_v34 }
  0x6f   :  { %1030 = vmatmul.mubr.f32.vlgmr.msra.gmra.mxu1 %v1263_v19 }
  0xe4   :  { %v128_v4 = vpop.f32.mrf.mxu0 }
  0xe6   :  { %v856_v5 = vpop.f32.mrf.mxu0 }
  0xeb   :  { %v279_v6 = vpop.f32.mrf.mxu1 }
  0xec   :  { %v280_v18 = vadd.f32 %v279_v6, %v128_v4 }
  0xed   :  { %v891_v10 = vpop.f32.mrf.mxu1 }
 0x104   :  { %v383_v11 = vpop.f32.mrf.mxu0 }
 0x105   :  { %v384_v21 = vadd.f32 %v383_v11, %v280_v18 }
 0x106   :  { %v926_v12 = vpop.f32.mrf.mxu0 }
 0x10d   :  { %v472_v15 = vpop.f32.mrf.mxu1 }
 0x10e   :  { %v473_v22 = vadd.f32 %v472_v15, %v384_v21 }
 0x10f   :  { %v961_v16 = vpop.f32.mrf.mxu1 }
 0x126   :  { %v591_v17 = vpop.f32.mrf.mxu0 }
 0x127   :  { %v592_v23 = vadd.f32 %v591_v17, %v473_v22 }
 0x128   :  { %v996_v20 = vpop.f32.mrf.mxu0 }
 0x12f   :  { %v678_v24 = vpop.f32.mrf.mxu1 }
 0x130   :  { %v679_v25 = vadd.f32 %v678_v24, %v592_v23 }
 0x131   :  { %v1031_v27 = vpop.f32.mrf.mxu1 }
 0x132   :  { %1035 = vrsqrt.f32 %v679_v25  ;;  %vm684_vm2 = vcmp.eq.f32.partialorder %v679_v25, inf  ;;  %v687_v29 = vand.u32 2147483648, %v679_v25  ;;  %vm686_vm3 = vcmp.eq.f32.partialorder %v679_v25, 0.0 }
 0x13f   :  { %v1036_v28 = vpop.eup %1035 }
 0x140   :  { %v683_v3 = vmul.f32 %v1036_v28, %v679_v25 }
 0x142   :  { %v685_v35 = vsel %vm684_vm2, %v679_v25, %v683_v3 }
 0x143   :  { %v688_v36 = vsel %vm686_vm3, %v687_v29, %v685_v35 }
 0x144   :  { %v690_v40 = vadd.f32 %v689_v30, %v688_v36 }
 0x146   :  { %692 = vst.msk [vmem:[#allocation2] sm:$0xf] %vm19_vm1, %v690_v40 }
 0x14d   :  { %v696_v42 = vld [vmem:[#allocation2] sm:$0xf] }
 0x14e   :  { %v697_v43 = vsel %vm19_vm1, %v696_v42, 0.0 }
 0x14f   :  { %v698_v46 = vrot.slane %v697_v43, 4 }
 0x151   :  { %v699_v47 = vadd.f32 %v698_v46, %v697_v43 }
 0x153   :  { %v700_v50 = vrot.slane %v699_v47, 2 }
 0x155   :  { %v701_v54 = vadd.f32 %v700_v50, %v699_v47 }
 0x157   :  { %v702_v56 = vrot.slane %v701_v54, 1 }
 0x159   :  { %v703_v57 = vadd.f32 %v702_v56, %v701_v54 }
 0x15b   :  { %705 = vst.msk [vmem:[#allocation3] sm:$0x1] %vm704_vm4, %v703_v57 }
 0x15c   :  { %1048 = shalt.err (!%p1045_p4)
}
 0x15d   :  { %715 = dma.vmem_to_hbm [thread:$0]  %s713_s19, 16, %s1509_s3, [#allocation4]  }
 0x15e   :  { %1057 = dma.done.wait [#allocation4], 16  }
 0x15f   :  { %1058 = vsyncadd [#allocation4], 4294967280 }
 0x160   :  { %719 = vsyncpa [#allocation4], 1 }

</bundles_post_ra>
